<compile_context>
chip_gen: v6e
topology: v6e:2x2x1
jax: 0.10.0
libtpu: 0.0.40
codegen_flags: <defaults>
</compile_context>

<pallas_src>
import math

import jax
import jax.numpy as jnp
from jax.experimental import pallas as pl
from jax.experimental.pallas import tpu as pltpu

LANE = 128
SUBLANE = 8


def _round_up(n, m):
    return ((n + m - 1) // m) * m


def _pad_to(a, shape):
    return jnp.pad(a, [(0, t - s) for s, t in zip(a.shape, shape)])


def _mlp_kernel(x_ref, w1_ref, b1_ref, w2_ref, b2_ref, w3_ref, b3_ref, o_ref):
    """One (TB, *) batch tile: 3 MXU matmuls, f32 accumulation, VPU bias+ReLU."""
    mdt = w1_ref.dtype  # matmul input dtype (f32 or bf16); biases stay f32

    h1 = jnp.dot(x_ref[...], w1_ref[...], preferred_element_type=jnp.float32) + b1_ref[...]
    h1 = jnp.maximum(h1, 0.0)

    h2 = jnp.dot(h1.astype(mdt), w2_ref[...], preferred_element_type=jnp.float32) + b2_ref[...]
    h2 = jnp.maximum(h2, 0.0)

    out = jnp.dot(h2.astype(mdt), w3_ref[...], preferred_element_type=jnp.float32) + b3_ref[...]
    o_ref[...] = out.astype(o_ref.dtype)


def prepare_params(params, *, compute_dtype=jnp.float32):
    """Pad / cast the weights ONCE (hoisted out of the per-call forward path).

    Hidden (64) is zero-padded to 128 lanes: padded bias lanes are 0 and padded W rows/cols are 0,
    so padded activations stay exactly 0 through ReLU and never leak into real outputs.
    The last layer's OUTPUT columns are NOT padded (narrow writeback, see out_specs).
    """
    state_dim, hidden = params["w1"].shape
    action_dim = params["w3"].shape[1]
    hid_p = _round_up(hidden, LANE)
    return {
        "w1": _pad_to(params["w1"], (state_dim, hid_p)).astype(compute_dtype),
        "b1": _pad_to(params["b1"], (1, hid_p)).astype(jnp.float32),
        "w2": _pad_to(params["w2"], (hid_p, hid_p)).astype(compute_dtype),
        "b2": _pad_to(params["b2"], (1, hid_p)).astype(jnp.float32),
        "w3": _pad_to(params["w3"], (hid_p, action_dim)).astype(compute_dtype),
        "b3": params["b3"].astype(jnp.float32),
    }


def pricing_q_network_forward(x, prepped, *, tb=4096, num_cores=1):
    """x: (B, state_dim) float32. prepped: output of prepare_params()."""
    B, state_dim = x.shape
    w1, b1 = prepped["w1"], prepped["b1"]
    w2, b2 = prepped["w2"], prepped["b2"]
    w3, b3 = prepped["w3"], prepped["b3"]
    assert w1.shape[0] == state_dim
    hid_p = w1.shape[1]
    action_dim = w3.shape[1]
    compute_dtype = w1.dtype
    out_dtype = compute_dtype  # bf16 compute -> bf16 output (halves the dominant HBM write)

    # --- batch tiling: TB multiple of 8, capped at `tb`; even #tiles across cores if multi-tile.
    b8 = _round_up(max(B, SUBLANE), SUBLANE)
    TB = min(_round_up(tb, SUBLANE), b8)
    n_tiles = -(-b8 // TB)
    if num_cores > 1 and n_tiles > 1:
        n_tiles = _round_up(n_tiles, num_cores)  # balance "parallel" grid across v7x's 2 TCs
    b_padded = n_tiles * TB
    xp = _pad_to(x, (b_padded, state_dim)).astype(compute_dtype)

    # --- explicit VMEM budget from the tile math (v5e default scoped VMEM is only 16 MiB).
    in_sz = jnp.dtype(compute_dtype).itemsize
    out_sz = jnp.dtype(out_dtype).itemsize
    vmem_est = (
        2 * TB * state_dim * in_sz                    # x tile, double-buffered
        + 2 * TB * action_dim * out_sz                # out tile, double-buffered
        + 2 * (w1.size + w2.size + w3.size) * in_sz   # resident weights (buffered)
        + 2 * (b1.size + b2.size + b3.size) * 4
        + 3 * TB * hid_p * 4                          # h1 / h2 / f32 staging
        + (4 << 20)                                   # headroom
    )
    vmem_limit = int(min(max(vmem_est, 32 << 20), 64 << 20))

    const = lambda a: pl.BlockSpec(a.shape, lambda i: (0,) * a.ndim)  # VMEM-resident constants

    out = pl.pallas_call(
        _mlp_kernel,
        out_shape=jax.ShapeDtypeStruct((b_padded, action_dim), out_dtype),
        grid=(n_tiles,),
        in_specs=[
            pl.BlockSpec((TB, state_dim), lambda i: (i, 0)),  # x tile follows the grid
            const(w1), const(b1), const(w2), const(b2), const(w3), const(b3),
        ],
        # Narrow output block: last dim == full array dim (action_dim), so the (8,128) rule holds;
        # HBM writeback is 8x smaller than a 128-lane-padded output and no column slice is needed.
        out_specs=pl.BlockSpec((TB, action_dim), lambda i: (i, 0)),
        compiler_params=pltpu.CompilerParams(
            dimension_semantics=("parallel",),
            vmem_limit_bytes=vmem_limit,
        ),
    )(xp, w1, b1, w2, b2, w3, b3)

    return out[:B] if b_padded != B else out


def init_params(key, state_dim, action_dim, hidden=64):
    """PyTorch nn.Linear default init (U[-1/sqrt(fan_in), 1/sqrt(fan_in)]); weights stored (in, out)."""
    keys = jax.random.split(key, 6)

    def linear(kw, kb, fan_in, fan_out):
        bound = 1.0 / math.sqrt(fan_in)
        w = jax.random.uniform(kw, (fan_in, fan_out), jnp.float32, -bound, bound)
        b = jax.random.uniform(kb, (1, fan_out), jnp.float32, -bound, bound)
        return w, b

    w1, b1 = linear(keys[0], keys[1], state_dim, hidden)
    w2, b2 = linear(keys[2], keys[3], hidden, hidden)
    w3, b3 = linear(keys[4], keys[5], hidden, action_dim)
    return {"w1": w1, "b1": b1, "w2": w2, "b2": b2, "w3": w3, "b3": b3}


def _reference_forward(x, params):
    h1 = jnp.maximum(x @ params["w1"] + params["b1"], 0.0)
    h2 = jnp.maximum(h1 @ params["w2"] + params["b2"], 0.0)
    return h2 @ params["w3"] + params["b3"]


if __name__ == "__main__":
    key = jax.random.PRNGKey(0)
    k_param, k_x1, k_x2, k_x3 = jax.random.split(key, 4)

    state_dim = 8
    action_dim = 16
    params = init_params(k_param, state_dim, action_dim)
    prepped_f32 = prepare_params(params)                                  # pad/cast once
    prepped_bf16 = prepare_params(params, compute_dtype=jnp.bfloat16)

    # Small, module-consistent shapes (single grid step, TB rounded to 8).
    x_small = jax.random.normal(k_x1, (2, state_dim), jnp.float32)
    out_small = jax.block_until_ready(pricing_q_network_forward(x_small, prepped_f32))
    ref_small = _reference_forward(x_small, params)
    assert out_small.shape == (2, action_dim)
    assert jnp.allclose(out_small, ref_small, atol=1e-5, rtol=1e-5)

    # Multi-tile path: B=300 with tb=128, num_cores=2 -> 4 tiles of 128 (padded to 512).
    x_big = jax.random.normal(k_x2, (300, state_dim), jnp.float32)
    out_big = jax.block_until_ready(
        pricing_q_network_forward(x_big, prepped_f32, tb=128, num_cores=2)
    )
    ref_big = _reference_forward(x_big, params)
    assert out_big.shape == (300, action_dim)
    assert jnp.allclose(out_big, ref_big, atol=1e-5, rtol=1e-5)

    # Large-tile default path (tb=4096), even grid across 2 cores.
    x_huge = jax.random.normal(k_x3, (5000, state_dim), jnp.float32)
    out_huge = jax.block_until_ready(pricing_q_network_forward(x_huge, prepped_f32, num_cores=2))
    ref_huge = _reference_forward(x_huge, params)
    assert out_huge.shape == (5000, action_dim)
    assert jnp.allclose(out_huge, ref_huge, atol=1e-5, rtol=1e-5)

    # bf16 compute + bf16 output path (halves dominant HBM traffic) — looser tolerance.
    out_bf16 = jax.block_until_ready(
        pricing_q_network_forward(x_big, prepped_bf16, tb=128)
    )
    assert out_bf16.dtype == jnp.bfloat16
    assert jnp.allclose(out_bf16.astype(jnp.float32), ref_big, atol=5e-2, rtol=5e-2)

    print("KERNEL_OK")
</pallas_src>

<mosaic_0001>
module attributes {stable_mosaic.version = 11 : i64} {
  func.func @_mlp_kernel(%arg0: i32, %arg1: memref<8x8xf32, #tpu.memory_space<vmem>>, %arg2: memref<8x128xf32, #tpu.memory_space<vmem>>, %arg3: memref<1x128xf32, #tpu.memory_space<vmem>>, %arg4: memref<128x128xf32, #tpu.memory_space<vmem>>, %arg5: memref<1x128xf32, #tpu.memory_space<vmem>>, %arg6: memref<128x16xf32, #tpu.memory_space<vmem>>, %arg7: memref<1x16xf32, #tpu.memory_space<vmem>>, %arg8: memref<8x16xf32, #tpu.memory_space<vmem>>) attributes {dimension_semantics = [#tpu.dimension_semantics<parallel>], iteration_bounds = array<i64: 1>, scalar_prefetch = 0 : i64, scratch_operands = 0 : i64, tpu.core_type = #tpu.core_type<tc>, window_params = [{transform_indices = @transform_0, window_bounds = array<i64: 8, 8>}, {pipeline_mode = #tpu.pipeline_mode<synchronous>, transform_indices = @transform_1, window_bounds = array<i64: 8, 128>}, {pipeline_mode = #tpu.pipeline_mode<synchronous>, transform_indices = @transform_2, window_bounds = array<i64: 1, 128>}, {pipeline_mode = #tpu.pipeline_mode<synchronous>, transform_indices = @transform_3, window_bounds = array<i64: 128, 128>}, {pipeline_mode = #tpu.pipeline_mode<synchronous>, transform_indices = @transform_4, window_bounds = array<i64: 1, 128>}, {pipeline_mode = #tpu.pipeline_mode<synchronous>, transform_indices = @transform_5, window_bounds = array<i64: 128, 16>}, {pipeline_mode = #tpu.pipeline_mode<synchronous>, transform_indices = @transform_6, window_bounds = array<i64: 1, 16>}, {transform_indices = @transform_7, window_bounds = array<i64: 8, 16>}]} {
    %c0 = arith.constant 0 : index
    %c0_0 = arith.constant 0 : index
    %0 = vector.load %arg1[%c0, %c0_0] : memref<8x8xf32, #tpu.memory_space<vmem>>, vector<8x8xf32>
    %c0_1 = arith.constant 0 : index
    %c0_2 = arith.constant 0 : index
    %1 = vector.load %arg2[%c0_1, %c0_2] : memref<8x128xf32, #tpu.memory_space<vmem>>, vector<8x128xf32>
    %cst = arith.constant dense<0.000000e+00> : vector<8x128xf32>
    %2 = tpu.matmul %0, %1, %cst {dimension_numbers = #tpu.dot_dimension_numbers<[1], [0], [0], [1], [0, 0, 1, 1], [], []>} : vector<8x8xf32>, vector<8x128xf32>, vector<8x128xf32> -> vector<8x128xf32>
    %c0_3 = arith.constant 0 : index
    %c0_4 = arith.constant 0 : index
    %3 = vector.load %arg3[%c0_3, %c0_4] : memref<1x128xf32, #tpu.memory_space<vmem>>, vector<1x128xf32>
    %4 = vector.broadcast %3 : vector<1x128xf32> to vector<8x128xf32>
    %5 = arith.addf %2, %4 : vector<8x128xf32>
    %cst_5 = arith.constant 0.000000e+00 : f32
    %6 = vector.broadcast %cst_5 : f32 to vector<8x128xf32>
    %7 = arith.maximumf %5, %6 : vector<8x128xf32>
    %c0_6 = arith.constant 0 : index
    %c0_7 = arith.constant 0 : index
    %8 = vector.load %arg4[%c0_6, %c0_7] : memref<128x128xf32, #tpu.memory_space<vmem>>, vector<128x128xf32>
    %cst_8 = arith.constant dense<0.000000e+00> : vector<8x128xf32>
    %9 = tpu.matmul %7, %8, %cst_8 {dimension_numbers = #tpu.dot_dimension_numbers<[1], [0], [0], [1], [0, 0, 1, 1], [], []>} : vector<8x128xf32>, vector<128x128xf32>, vector<8x128xf32> -> vector<8x128xf32>
    %c0_9 = arith.constant 0 : index
    %c0_10 = arith.constant 0 : index
    %10 = vector.load %arg5[%c0_9, %c0_10] : memref<1x128xf32, #tpu.memory_space<vmem>>, vector<1x128xf32>
    %11 = vector.broadcast %10 : vector<1x128xf32> to vector<8x128xf32>
    %12 = arith.addf %9, %11 : vector<8x128xf32>
    %cst_11 = arith.constant 0.000000e+00 : f32
    %13 = vector.broadcast %cst_11 : f32 to vector<8x128xf32>
    %14 = arith.maximumf %12, %13 : vector<8x128xf32>
    %c0_12 = arith.constant 0 : index
    %c0_13 = arith.constant 0 : index
    %15 = vector.load %arg6[%c0_12, %c0_13] : memref<128x16xf32, #tpu.memory_space<vmem>>, vector<128x16xf32>
    %cst_14 = arith.constant dense<0.000000e+00> : vector<8x16xf32>
    %16 = tpu.matmul %14, %15, %cst_14 {dimension_numbers = #tpu.dot_dimension_numbers<[1], [0], [0], [1], [0, 0, 1, 1], [], []>} : vector<8x128xf32>, vector<128x16xf32>, vector<8x16xf32> -> vector<8x16xf32>
    %c0_15 = arith.constant 0 : index
    %c0_16 = arith.constant 0 : index
    %17 = vector.load %arg7[%c0_15, %c0_16] : memref<1x16xf32, #tpu.memory_space<vmem>>, vector<1x16xf32>
    %18 = vector.broadcast %17 : vector<1x16xf32> to vector<8x16xf32>
    %19 = arith.addf %16, %18 : vector<8x16xf32>
    %c0_17 = arith.constant 0 : index
    %c0_18 = arith.constant 0 : index
    %20 = vector.load %arg8[%c0_17, %c0_18] : memref<8x16xf32, #tpu.memory_space<vmem>>, vector<8x16xf32>
    tpu.vector_store %arg8[%c0_17, %c0_18], %19 {strides = array<i32>} : memref<8x16xf32, #tpu.memory_space<vmem>>, vector<8x16xf32>,
    return
  }
  func.func @transform_0(%arg0: i32) -> (i32, i32) {
    %c0_i32 = arith.constant 0 : i32
    %c0_i32_0 = arith.constant 0 : i32
    return %arg0, %c0_i32 : i32, i32
  }
  func.func @transform_1(%arg0: i32) -> (i32, i32) {
    %c0_i32 = arith.constant 0 : i32
    %c0_i32_0 = arith.constant 0 : i32
    %c0_i32_1 = arith.constant 0 : i32
    return %c0_i32, %c0_i32_0 : i32, i32
  }
  func.func @transform_2(%arg0: i32) -> (i32, i32) {
    %c0_i32 = arith.constant 0 : i32
    %c0_i32_0 = arith.constant 0 : i32
    %c0_i32_1 = arith.constant 0 : i32
    return %c0_i32, %c0_i32_0 : i32, i32
  }
  func.func @transform_3(%arg0: i32) -> (i32, i32) {
    %c0_i32 = arith.constant 0 : i32
    %c0_i32_0 = arith.constant 0 : i32
    %c0_i32_1 = arith.constant 0 : i32
    return %c0_i32, %c0_i32_0 : i32, i32
  }
  func.func @transform_4(%arg0: i32) -> (i32, i32) {
    %c0_i32 = arith.constant 0 : i32
    %c0_i32_0 = arith.constant 0 : i32
    %c0_i32_1 = arith.constant 0 : i32
    return %c0_i32, %c0_i32_0 : i32, i32
  }
  func.func @transform_5(%arg0: i32) -> (i32, i32) {
    %c0_i32 = arith.constant 0 : i32
    %c0_i32_0 = arith.constant 0 : i32
    %c0_i32_1 = arith.constant 0 : i32
    return %c0_i32, %c0_i32_0 : i32, i32
  }
  func.func @transform_6(%arg0: i32) -> (i32, i32) {
    %c0_i32 = arith.constant 0 : i32
    %c0_i32_0 = arith.constant 0 : i32
    %c0_i32_1 = arith.constant 0 : i32
    return %c0_i32, %c0_i32_0 : i32, i32
  }
  func.func @transform_7(%arg0: i32) -> (i32, i32) {
    %c0_i32 = arith.constant 0 : i32
    %c0_i32_0 = arith.constant 0 : i32
    return %arg0, %c0_i32 : i32, i32
  }
}

</mosaic_0001>

<bundles_post_ra>
// kernel: tpu_custom_call.1
= control target key start
LH: loop header
LB: loop body
LE: loop exit
PB: predicated region body
PF: predicated region fallthrough
CT: control target
= control target key end

     0   :  { %vm36_vm0 = vcmask 64512   ;;  %v454_v3 = vmov 0.0   ;;  %vm455_vm1 = vmmov 0   ;;  %s647_s0 = inlined_call_operand.vmem [shape: f32[8,8], index: 0, kind: input, shape index: {}]   ;;  %s648_s1 = inlined_call_operand.vmem [shape: f32[8,128], index: 1, kind: input, shape index: {}]   ;;  %s649_s2 = inlined_call_operand.vmem [shape: f32[1,128], index: 2, kind: input, shape index: {}]   ;;  %s650_s3 = inlined_call_operand.vmem [shape: f32[128,128], index: 3, kind: input, shape index: {}]   ;;  %s651_s4 = inlined_call_operand.vmem [shape: f32[1,128], index: 4, kind: input, shape index: {}]   ;;  %s652_s5 = inlined_call_operand.vmem [shape: f32[128,16], index: 5, kind: input, shape index: {}]   ;;  %s653_s6 = inlined_call_operand.vmem [shape: f32[1,16], index: 6, kind: input, shape index: {}]   ;;  %s654_s7 = inlined_call_operand.hbm [shape: f32[8,16], index: 7, kind: output, shape index: {}]  }
   0x1   :  { %v28_v0 = vld [vmem:[%s648_s1] sm:$0xff]  ;;  %v126_v2 = vld [vmem:[%s650_s3 + $0x78] sm:$0xff]  ;;  %354 = vmatprep.subr.mxu0 %v454_v3  ;;  %356 = vmatprep.mubr.msk.f32.mxu0 %vm455_vm1, %v454_v3  ;;  %v125_v4 = vld [vmem:[%s650_s3 + $0x70] sm:$0xff] }
   0x2   :  { %v27_v1 = vld [vmem:[%s647_s0] sm:$0xff]  ;;  %355 = vmatpush3.msra.mxu0 %v28_v0  ;;  %359 = vmatprep.subr.mxu1 %v454_v3  ;;  %v124_v5 = vld [vmem:[%s650_s3 + $0x68] sm:$0xff] }
   0x3   :  { %357 = vmatmul.mubr.msk.f32.vlgmr.msra.gmra.mxu0 %vm36_vm0, %v27_v1  ;;  %360 = vmatpush3.msra.mxu1 %v126_v2 }
   0x4   :  { %361 = vmatprep.subr.mxu1 %v454_v3  ;;  %391 = vmatprep.mubr.msk.f32.mxu1 %vm455_vm1, %v454_v3 }
   0x5   :  { %362 = vmatpush3.msra.mxu1 %v125_v4  ;;  %394 = vmatprep.subr.mxu0 %v454_v3 }
   0x6   :  { %12 = vsyncpa [#allocation3], 0  ;;  %363 = vmatprep.subr.mxu1 %v454_v3  ;;  %v123_v6 = vld [vmem:[%s650_s3 + $0x60] sm:$0xff]  ;;  %426 = vmatprep.mubr.msk.f32.mxu0 %vm455_vm1, %v454_v3  ;;  %v122_v7 = vld [vmem:[%s650_s3 + $0x58] sm:$0xff]  ;;  %s456_s20 = smov [#allocation2]   ;;  %vm298_vm2 = vcmask 130048  }
   0x7   :  { %364 = vmatpush3.msra.mxu1 %v124_v5  ;;  %v121_v8 = vld [vmem:[%s650_s3 + $0x50] sm:$0xff]  ;;  %v120_v9 = vld [vmem:[%s650_s3 + $0x48] sm:$0xff]  ;;  %v119_v10 = vld [vmem:[%s650_s3 + $0x40] sm:$0xff]  ;;  %s306_s21 = sshll.u32 %s456_s20, 4  ;;  %s307_s21 = int_to_ptr.vmem [resolvable:$true] %s306_s21 }
   0x8   :  { %365 = vmatprep.subr.mxu1 %v454_v3  ;;  %v118_v11 = vld [vmem:[%s650_s3 + $0x38] sm:$0xff]  ;;  %v117_v12 = vld [vmem:[%s650_s3 + $0x30] sm:$0xff]  ;;  %v116_v13 = vld [vmem:[%s650_s3 + $0x28] sm:$0xff]  ;;  %p437_p1 = scmp.lt.s32.totalorder %s307_s21, %s307_s21 }
   0x9   :  { %366 = vmatpush3.msra.mxu1 %v123_v6  ;;  %v115_v14 = vld [vmem:[%s650_s3 + $0x20] sm:$0xff]  ;;  %v114_v15 = vld [vmem:[%s650_s3 + $0x18] sm:$0xff]  ;;  %v113_v16 = vld [vmem:[%s650_s3 + $0x10] sm:$0xff] }
   0xa   :  { %367 = vmatprep.subr.mxu1 %v454_v3  ;;  %v112_v17 = vld [vmem:[%s650_s3 + $0x8] sm:$0xff]  ;;  %v111_v18 = vld [vmem:[%s650_s3] sm:$0xff]  ;;  %v220_v19 = vld [vmem:[%s652_s5 + $0x78] sm:$0xff] }
   0xb   :  { %368 = vmatpush3.msra.mxu1 %v122_v7  ;;  %v219_v20 = vld [vmem:[%s652_s5 + $0x70] sm:$0xff]  ;;  %395 = vmatpush3.msra.mxu0 %v220_v19  ;;  %v218_v21 = vld [vmem:[%s652_s5 + $0x68] sm:$0xff]  ;;  %v217_v22 = vld [vmem:[%s652_s5 + $0x60] sm:$0xff] }
   0xc   :  { %369 = vmatprep.subr.mxu1 %v454_v3  ;;  %396 = vmatprep.subr.mxu0 %v454_v3  ;;  %v216_v23 = vld [vmem:[%s652_s5 + $0x58] sm:$0xff]  ;;  %v215_v24 = vld [vmem:[%s652_s5 + $0x50] sm:$0xff]  ;;  %v214_v25 = vld [vmem:[%s652_s5 + $0x48] sm:$0xff] }
   0xd   :  { %370 = vmatpush3.msra.mxu1 %v121_v8  ;;  %397 = vmatpush3.msra.mxu0 %v219_v20  ;;  %v213_v26 = vld [vmem:[%s652_s5 + $0x40] sm:$0xff]  ;;  %v212_v27 = vld [vmem:[%s652_s5 + $0x38] sm:$0xff]  ;;  %v211_v28 = vld [vmem:[%s652_s5 + $0x30] sm:$0xff] }
   0xe   :  { %371 = vmatprep.subr.mxu1 %v454_v3  ;;  %398 = vmatprep.subr.mxu0 %v454_v3  ;;  %v210_v29 = vld [vmem:[%s652_s5 + $0x28] sm:$0xff]  ;;  %v209_v30 = vld [vmem:[%s652_s5 + $0x20] sm:$0xff]  ;;  %v208_v31 = vld [vmem:[%s652_s5 + $0x18] sm:$0xff] }
   0xf   :  { %372 = vmatpush3.msra.mxu1 %v120_v9  ;;  %399 = vmatpush3.msra.mxu0 %v218_v21  ;;  %v314_v32 = vld [vmem:[%s649_s2] ss:$0 sm:$0xff]  ;;  %v207_v37 = vld [vmem:[%s652_s5 + $0x10] sm:$0xff]  ;;  %v206_v38 = vld [vmem:[%s652_s5 + $0x8] sm:$0xff] }
  0x10   :  { %373 = vmatprep.subr.mxu1 %v454_v3  ;;  %400 = vmatprep.subr.mxu0 %v454_v3  ;;  %v205_v39 = vld [vmem:[%s652_s5] sm:$0xff]  ;;  %s432_s5 = scalar_lea.vmem %s307_s21, 128 }
  0x11   :  { %374 = vmatpush3.msra.mxu1 %v119_v10  ;;  %401 = vmatpush3.msra.mxu0 %v217_v22  ;;  %v316_v40 = vld [vmem:[%s651_s4] ss:$0 sm:$0xff]  ;;  %p433_p0 = scmp.ne.s32.totalorder %s307_s21, %s432_s5  ;;  %p438_p2 = scmp.lt.s32.totalorder %s432_s5, %s432_s5 }
  0x12   :  { %375 = vmatprep.subr.mxu1 %v454_v3  ;;  %402 = vmatprep.subr.mxu0 %v454_v3  ;;  %v317_v45 = vld [vmem:[%s653_s6] ss:$0 sm:$0xff] }
  0x13   :  { %376 = vmatpush3.msra.mxu1 %v118_v11  ;;  %403 = vmatpush3.msra.mxu0 %v216_v23  ;;  %p439_p3 = por %p438_p2, %p437_p1 }
  0x14   :  { %377 = vmatprep.subr.mxu1 %v454_v3  ;;  %404 = vmatprep.subr.mxu0 %v454_v3 }
  0x15   :  { %378 = vmatpush3.msra.mxu1 %v117_v12  ;;  %405 = vmatpush3.msra.mxu0 %v215_v24  ;;  %p440_p4 = pnand %p439_p3, %p433_p0 }
  0x16   :  { %379 = vmatprep.subr.mxu1 %v454_v3  ;;  %406 = vmatprep.subr.mxu0 %v454_v3 }
  0x17   :  { %380 = vmatpush3.msra.mxu1 %v116_v13  ;;  %407 = vmatpush3.msra.mxu0 %v214_v25 }
  0x18   :  { %381 = vmatprep.subr.mxu1 %v454_v3  ;;  %408 = vmatprep.subr.mxu0 %v454_v3 }
  0x19   :  { %382 = vmatpush3.msra.mxu1 %v115_v14  ;;  %409 = vmatpush3.msra.mxu0 %v213_v26 }
  0x1a   :  { %383 = vmatprep.subr.mxu1 %v454_v3  ;;  %410 = vmatprep.subr.mxu0 %v454_v3 }
  0x1b   :  { %384 = vmatpush3.msra.mxu1 %v114_v15  ;;  %411 = vmatpush3.msra.mxu0 %v212_v27 }
  0x1c   :  { %385 = vmatprep.subr.mxu1 %v454_v3  ;;  %412 = vmatprep.subr.mxu0 %v454_v3 }
  0x1d   :  { %386 = vmatpush3.msra.mxu1 %v113_v16  ;;  %413 = vmatpush3.msra.mxu0 %v211_v28 }
  0x1e   :  { %387 = vmatprep.subr.mxu1 %v454_v3  ;;  %414 = vmatprep.subr.mxu0 %v454_v3 }
  0x1f   :  { %388 = vmatpush3.msra.mxu1 %v112_v17  ;;  %415 = vmatpush3.msra.mxu0 %v210_v29 }
  0x20   :  { %389 = vmatprep.subr.mxu1 %v454_v3  ;;  %416 = vmatprep.subr.mxu0 %v454_v3 }
  0x21   :  { %390 = vmatpush3.msra.mxu1 %v111_v18  ;;  %417 = vmatpush3.msra.mxu0 %v209_v30 }
  0x22   :  { %418 = vmatprep.subr.mxu0 %v454_v3 }
  0x23   :  { %419 = vmatpush3.msra.mxu0 %v208_v31 }
  0x24   :  { %420 = vmatprep.subr.mxu0 %v454_v3 }
  0x25   :  { %421 = vmatpush3.msra.mxu0 %v207_v37 }
  0x26   :  { %422 = vmatprep.subr.mxu0 %v454_v3 }
  0x27   :  { %423 = vmatpush3.msra.mxu0 %v206_v38 }
  0x28   :  { %424 = vmatprep.subr.mxu0 %v454_v3 }
  0x29   :  { %425 = vmatpush3.msra.mxu0 %v205_v39 }
  0xc3   :  { %v106_v33 = vpop.f32.mrf.mxu0 }
  0xc4   :  { %v107_v34 = vadd.f32 %v314_v32, %v106_v33 }
  0xc5   :  { %v358_v35 = vpop.f32.mrf.mxu0 }
  0xc6   :  { %v110_v36 = vmax.f32 %v107_v34, 0.0 }
  0xc8   :  { %392 = vmatmul.mubr.f32.vlgmr.msra.gmra.mxu1 %v110_v36 }
 0x188   :  { %v200_v41 = vpop.f32.mrf.mxu1 }
 0x189   :  { %v201_v42 = vadd.f32 %v316_v40, %v200_v41 }
 0x18a   :  { %v393_v43 = vpop.f32.mrf.mxu1 }
 0x18b   :  { %v204_v44 = vmax.f32 %v201_v42, 0.0 }
 0x18d   :  { %427 = vmatmul.mubr.f32.vlgmr.msra.gmra.mxu0 %v204_v44 }
 0x24d   :  { %v294_v46 = vpop.f32.mrf.mxu0 }
 0x24e   :  { %v295_v47 = vadd.f32 %v317_v45, %v294_v46 }
 0x24f   :  { %v428_v48 = vpop.f32.mrf.mxu0 }
 0x250   :  { %299 = vst.msk [vmem:[#allocation2] sm:$0xff] %vm298_vm2, %v295_v47 }
 0x251   :  { %443 = shalt.err (!%p440_p4)
}
 0x252   :  { %309 = dma.vmem_to_hbm [thread:$0]  %s307_s21, 128, %s654_s7, [#allocation3]  }
 0x253   :  { %452 = dma.done.wait [#allocation3], 128  }
 0x254   :  { %453 = vsyncadd [#allocation3], 4294967168 }
 0x255   :  { %313 = vsyncpa [#allocation3], 1 }

</bundles_post_ra>
